<compile_context>
chip_gen: v5e
topology: v5e:2x2
jax: 0.10.0
libtpu: 0.0.40
codegen_flags: <defaults>
</compile_context>

<pallas_src>
import jax
import jax.numpy as jnp
from jax.experimental import pallas as pl
from jax.experimental.pallas import tpu as pltpu


def summary_kernel(logits_ref, idx_ref, lp_ref):
    """Per-row class decision (one N-tile per grid step).

    logits_ref : [T, C] float  — raw per-class scores (stand-in for API logprobs)
    idx_ref    : [T, 1] int32  — predicted class index per example
    lp_ref     : [T, 1] f32    — log-softmax value of the predicted class
    """
    x = logits_ref[...].astype(jnp.float32)                       # [T, C]
    t, c = x.shape

    # One cross-lane max + one cross-lane sum (online-logsumexp style; no
    # materialized log-softmax needed for either output).
    m = jnp.max(x, axis=-1, keepdims=True)                        # [T, 1]  XLU
    s = jnp.sum(jnp.exp(x - m), axis=-1, keepdims=True)           # [T, 1]  EUP+XLU

    # Argmax with ties resolving to the smallest index ("first class wins").
    col = jax.lax.broadcasted_iota(jnp.int32, (t, c), 1)          # [T, C]
    idx = jnp.min(jnp.where(x >= m, col, jnp.int32(c)),
                  axis=-1, keepdims=True)                         # [T, 1]

    idx_ref[...] = idx.astype(jnp.int32)
    lp_ref[...] = -jnp.log(s)                                     # == m - logsumexp(x)


def summary_predict(logits, tile_n=None):
    """Runs the class-decision kernel over an [N, C] batch, tiled over N."""
    N, C = logits.shape

    if tile_n is None:
        # Size the row tile so the double-buffered f32 input block stays well
        # under the scoped-VMEM budget: 2 bufs x TILE_N x C x 4 B <= ~8 MiB.
        bytes_per_row = C * 4
        tile_n = max(8, min(1024, (4 * 1024 * 1024) // bytes_per_row))
    tile_n = max(8, (tile_n // 8) * 8)            # (8, 128) sublane constraint
    n_pad = pl.cdiv(N, tile_n) * tile_n
    tile_n = min(tile_n, n_pad)

    x = logits if n_pad == N else jnp.pad(logits, ((0, n_pad - N), (0, 0)))
    grid = (n_pad // tile_n,)

    idx, lp = pl.pallas_call(
        summary_kernel,
        out_shape=(
            jax.ShapeDtypeStruct((n_pad, 1), jnp.int32),
            jax.ShapeDtypeStruct((n_pad, 1), jnp.float32),
        ),
        grid=grid,
        in_specs=[pl.BlockSpec((tile_n, C), lambda i: (i, 0))],
        out_specs=(
            pl.BlockSpec((tile_n, 1), lambda i: (i, 0)),
            pl.BlockSpec((tile_n, 1), lambda i: (i, 0)),
        ),
        compiler_params=pltpu.CompilerParams(
            dimension_semantics=("parallel",),   # independent rows -> megacore
        ),
    )(x)
    return idx[:N], lp[:N]


if __name__ == "__main__":
    # Deterministic synthetic inputs: 512 "examples", 128 "classes".
    # (The real module's inputs are text strings; these logits stand in for the
    #  per-class log-probabilities returned by the completion API.)
    key = jax.random.PRNGKey(0)
    N, C = 512, 128
    logits = jax.random.normal(key, (N, C), dtype=jnp.float32)

    # tile_n=128 -> grid=(4,): exercises the DMA/compute pipeline + parallel axis.
    pred_idx, pred_logprob = summary_predict(logits, tile_n=128)
    jax.block_until_ready((pred_idx, pred_logprob))

    # Sanity check against a pure-JAX reference.
    ref_lp = jax.nn.log_softmax(logits, axis=-1)
    ref_idx = jnp.argmax(ref_lp, axis=-1).reshape(N, 1).astype(jnp.int32)
    ref_max = jnp.max(ref_lp, axis=-1, keepdims=True)
    assert bool(jnp.all(pred_idx == ref_idx))
    assert bool(jnp.allclose(pred_logprob, ref_max, atol=1e-5))

    print("KERNEL_OK")
</pallas_src>

<mosaic_0001>
module attributes {stable_mosaic.version = 11 : i64} {
  func.func @summary_kernel(%arg0: i32, %arg1: memref<128x128xf32, #tpu.memory_space<vmem>>, %arg2: memref<128x1xi32, #tpu.memory_space<vmem>>, %arg3: memref<128x1xf32, #tpu.memory_space<vmem>>) attributes {dimension_semantics = [#tpu.dimension_semantics<parallel>], iteration_bounds = array<i64: 4>, scalar_prefetch = 0 : i64, scratch_operands = 0 : i64, tpu.core_type = #tpu.core_type<tc>, window_params = [{transform_indices = @transform_0, window_bounds = array<i64: 128, 128>}, {transform_indices = @transform_1, window_bounds = array<i64: 128, 1>}, {transform_indices = @transform_2, window_bounds = array<i64: 128, 1>}]} {
    %c0 = arith.constant 0 : index
    %c0_0 = arith.constant 0 : index
    %0 = vector.load %arg1[%c0, %c0_0] : memref<128x128xf32, #tpu.memory_space<vmem>>, vector<128x128xf32>
    %cst = arith.constant dense<0xFF800000> : vector<128xf32>
    %1 = vector.multi_reduction <maximumf>, %0, %cst [1] : vector<128x128xf32> to vector<128xf32>
    %2 = vector.shape_cast %1 : vector<128xf32> to vector<128x1xf32>
    %3 = vector.broadcast %2 : vector<128x1xf32> to vector<128x128xf32>
    %4 = arith.subf %0, %3 : vector<128x128xf32>
    %5 = math.exp %4 : vector<128x128xf32>
    %cst_1 = arith.constant dense<0.000000e+00> : vector<128xf32>
    %6 = vector.multi_reduction <add>, %5, %cst_1 [1] : vector<128x128xf32> to vector<128xf32>
    %7 = vector.shape_cast %6 : vector<128xf32> to vector<128x1xf32>
    %8 = tpu.iota {dimensions = array<i32: 1>} : vector<128x128xi32>
    %9 = vector.broadcast %2 : vector<128x1xf32> to vector<128x128xf32>
    %10 = arith.cmpf oge, %0, %9 : vector<128x128xf32>
    %c128_i32 = arith.constant 128 : i32
    %11 = vector.broadcast %c128_i32 : i32 to vector<128x128xi32>
    %12 = arith.select %10, %8, %11 : vector<128x128xi1>, vector<128x128xi32>
    %cst_2 = arith.constant dense<2147483647> : vector<128xi32>
    %13 = vector.multi_reduction <minsi>, %12, %cst_2 [1] : vector<128x128xi32> to vector<128xi32>
    %14 = vector.shape_cast %13 : vector<128xi32> to vector<128x1xi32>
    %c0_3 = arith.constant 0 : index
    %c0_4 = arith.constant 0 : index
    %15 = vector.load %arg2[%c0_3, %c0_4] : memref<128x1xi32, #tpu.memory_space<vmem>>, vector<128x1xi32>
    tpu.vector_store %arg2[%c0_3, %c0_4], %14 {strides = array<i32>} : memref<128x1xi32, #tpu.memory_space<vmem>>, vector<128x1xi32>,
    %16 = math.log %7 : vector<128x1xf32>
    %cst_5 = arith.constant 0.000000e+00 : f32
    %17 = vector.broadcast %cst_5 : f32 to vector<128x1xf32>
    %18 = arith.subf %17, %16 : vector<128x1xf32>
    %c0_6 = arith.constant 0 : index
    %c0_7 = arith.constant 0 : index
    %19 = vector.load %arg3[%c0_6, %c0_7] : memref<128x1xf32, #tpu.memory_space<vmem>>, vector<128x1xf32>
    tpu.vector_store %arg3[%c0_6, %c0_7], %18 {strides = array<i32>} : memref<128x1xf32, #tpu.memory_space<vmem>>, vector<128x1xf32>,
    return
  }
  func.func @transform_0(%arg0: i32) -> (i32, i32) {
    %c0_i32 = arith.constant 0 : i32
    %c0_i32_0 = arith.constant 0 : i32
    return %arg0, %c0_i32 : i32, i32
  }
  func.func @transform_1(%arg0: i32) -> (i32, i32) {
    %c0_i32 = arith.constant 0 : i32
    %c0_i32_0 = arith.constant 0 : i32
    return %arg0, %c0_i32 : i32, i32
  }
  func.func @transform_2(%arg0: i32) -> (i32, i32) {
    %c0_i32 = arith.constant 0 : i32
    %c0_i32_0 = arith.constant 0 : i32
    return %arg0, %c0_i32 : i32, i32
  }
}

</mosaic_0001>

<bundles_post_ra>
// kernel: tpu_custom_call.1
= control target key start
LH: loop header
LB: loop body
LE: loop exit
PB: predicated region body
PF: predicated region fallthrough
CT: control target
= control target key end

     0   :  { %8 = vsyncpa [#allocation3], 0  ;;  %s1495_s0 = inlined_call_operand.hbm [shape: f32[512,128], index: 0, kind: input, shape index: {}]   ;;  %s1496_s1 = inlined_call_operand.vmem [shape: s32[512,1], index: 1, kind: output, shape index: {0}]   ;;  %s1497_s2 = inlined_call_operand.vmem [shape: f32[512,1], index: 2, kind: output, shape index: {1}]  }
   0x1   :  { %10 = vsyncpa [#allocation3 + $0x1], 0  ;;  %s954_s9 = smov 0   ;;  %s956_s10 = smov 0  }
   0x2   :  { %s958_s11 = smov 0   ;;  %s960_s12 = smov 0  }
   0x3 LB: > { %s750_s13 = sadd.s32 4294967295, %s935_s12   ;;  %s974_s14 = sadd.s32 1, %s935_s12   ;;  %s935_s12 = sphi %s960_s12, %s1513_s12   ;;  %s931_s11 = sphi %s958_s11, %s1512_s11   ;;  %s927_s10 = sphi %s956_s10, %s1511_s10   ;;  %s923_s9 = sphi %s954_s9, %s1510_s9  }
   0x4   : > { %s20_s15 = ssub.s32 %s935_s12, %s974_s14  ;;  %s23_s16 = sadd.s32 1, %s931_s11 }
   0x5   : > { %p21_p0 = scmp.eq.s32.totalorder %s20_s15, 0  ;;  %p30_p1 = scmp.ne.s32.totalorder %s931_s11, %s927_s10 }
   0x6   : > { %p31_p2 = scmp.eq.s32.totalorder %s935_s12, 0  ;;  %p36_p3 = scmp.ne.s32.totalorder %s927_s10, %s923_s9 }
   0x7   : > { %s984_s17 = scalar_select %p21_p0, %s931_s11, %s23_s16  }
   0x8   : > { %p986_p4 = por %p31_p2, %p30_p1  ;;  %p37_p5 = scmp.eq.s32.totalorder %s750_s13, 0 }
   0x9   : > { %p772_p6 = scmp.lt.s32.totalorder %s935_s12, 4  ;;  %s112_s20 = sand.u32 1, %s931_s11  }
   0xa   : > { %p993_p7 = por %p37_p5, %p36_p3  ;;  %s754_s21 = sshll.u32 %s112_s20, 7 }
   0xb   : > { %s765_s22 = sshll.u32 %s935_s12, 7  ;;  %s116_s26 = scalar_lea.vmem [#allocation2], %s754_s21 }
   0xc   : > { %s121_s25 = scalar_lea.hbm %s1495_s0, %s765_s22  ;;  %s124_s27 = sshll.u32 %s116_s26, 4  ;;  %s125_s27 = int_to_ptr.vmem [resolvable:$true] %s124_s27 }
   0xd   : > { %s122_s28 = sshll.u32 %s121_s25, 4  ;;  %p1004_p8 = pnand %p772_p6, %p986_p4  ;;  %s123_s28 = int_to_ptr.hbm [resolvable:$true] %s122_s28 }
   0xe   : > { %p757_p9 = scmp.ge.s32.totalorder %s935_s12, 1  ;;  %s113_s30 = scalar_lea.sflag [#allocation3], %s112_s20 }
   0xf   : > { %s871_s3 = sshra.s32 %s123_s28, 4  ;;  %p875_p11 = pneg %p1004_p8  ;;  %s872_s3 = int_to_ptr.hbm [resolvable:$true] %s871_s3 }
  0x10   : > { %s873_s4 = scalar_lea.hbm %s872_s3, 128  ;;  %s878_s7 = scalar_lea.hbm %s1495_s0, 512 }
  0x11   : > { %p874_p10 = scmp.ne.s32.totalorder %s872_s3, %s873_s4  ;;  %p879_p0 = scmp.lt.s32.totalorder %s872_s3, %s1495_s0 }
  0x12   : > { %p880_p1 = scmp.lt.s32.totalorder %s878_s7, %s873_s4 }
  0x13   : > { %p876_p12 = pnand %p875_p11, %p874_p10 }
  0x14   : > { %p881_p2 = por %p880_p1, %p879_p0 }
  0x15   : > { %p877_p13 = pneg %p876_p12 }
  0x17   : > { %p882_p3 = pnand %p881_p2, %p877_p13 }
  0x19   : > { %885 = shalt.err (!%p882_p3)
}
  0x1a   : > { %s937_s15 = smov 128   ;;  %s938_s16 = smov 8  }
  0x1b   : > { %771 = dma.hbm_to_vmem [thread:$0]  (!%p1004_p8), %s123_s28, 2048, %s125_s27, %s113_s30, %s937_s15, %s937_s15, %s938_s16  }
  0x1c   : > { %p132_p4 = scmp.lt.s32.totalorder %s935_s12, 5 }
  0x1e   : > { %p133_p5 = pnand %p757_p9, %p132_p4 }
  0x20   : > { %136 = sbr.rel (%p133_p5) target bundleno = 453 (0x1c5), region = 24 }
  0x25   : > { %s138_s18 = sand.u32 1, %s927_s10  }
  0x26   : > { %s758_s20 = sshll.u32 %s138_s18, 7  ;;  %s139_s21 = scalar_lea.sflag [#allocation3], %s138_s18 }
  0x27   : > { %s1023_s22 = scalar_lea.vmem [#allocation2], %s758_s20 }
  0x28   : > { %918 = dma.done.wait (%p993_p7), %s139_s21, 2048  }
  0x29   : > { %920 = vsyncadd (%p993_p7), %s139_s21, 4294965248  ;;  %v1030_v0 = vld [vmem:[%s1023_s22 + $0x20] sm:$0xff]  ;;  %v1033_v1 = vld [vmem:[%s1023_s22 + $0x10] sm:$0xff]  ;;  %v310_v16 = vlaneseq  ;;  %s759_s19 = sshll.u32 %s750_s13, 4 }
  0x2a   : > { %v1036_v2 = vld [vmem:[%s1023_s22] sm:$0xff]  ;;  %206 = vmax.xlane.f32.xlu2 %v1030_v0  ;;  %202 = vmax.xlane.f32.xlu1 %v1033_v1  ;;  %v1042_v3 = vld [vmem:[%s1023_s22 + $0x28] sm:$0xff]  ;;  %v1045_v4 = vld [vmem:[%s1023_s22 + $0x18] sm:$0xff]  ;;  %p171_p6 = scmp.lt.s32.totalorder %s759_s19, 63 }
  0x2b   : > { %198 = vmax.xlane.f32.xlu0 %v1036_v2  ;;  %v1048_v5 = vld [vmem:[%s1023_s22 + $0x8] sm:$0xff]  ;;  %v1054_v6 = vld [vmem:[%s1023_s22 + $0x40] sm:$0xff]  ;;  %v1057_v7 = vld [vmem:[%s1023_s22 + $0x38] sm:$0xff]  ;;  %v1093_v17 = vand.u32 127, %v310_v16 }
  0x2c   : > { %v1060_v8 = vld [vmem:[%s1023_s22 + $0x30] sm:$0xff]  ;;  %v1066_v9 = vld [vmem:[%s1023_s22 + $0x58] sm:$0xff]  ;;  %v1072_v11 = vld [vmem:[%s1023_s22 + $0x48] sm:$0xff]  ;;  %s1515_s19 = smov (!%p171_p6, %s759_s19), 63 }
  0x2d   : > { %v1069_v10 = vld [vmem:[%s1023_s22 + $0x50] sm:$0xff]  ;;  %v1081_v13 = vld [vmem:[%s1023_s22 + $0x68] sm:$0xff]  ;;  %v1084_v14 = vld [vmem:[%s1023_s22 + $0x60] sm:$0xff]  ;;  %s760_s12 = sshll.u32 %s1515_s19, 3 }
  0x2e   : > { %v1078_v12 = vld [vmem:[%s1023_s22 + $0x70] sm:$0xff]  ;;  %v1090_v15 = vld [vmem:[%s1023_s22 + $0x78] sm:$0xff]  ;;  %s1387_s24 = scalar_lea.vmem %s1497_s2, %s760_s12  ;;  %s1433_s27 = scalar_lea.vmem %s1496_s1, %s760_s12 }
  0x32   : > { %208 = vmax.xlane.f32.xlu2 %v1042_v3  ;;  %204 = vmax.xlane.f32.xlu1 %v1045_v4 }
  0x33   : > { %200 = vmax.xlane.f32.xlu0 %v1048_v5 }
  0x3a   : > { %214 = vmax.xlane.f32.xlu2 %v1054_v6  ;;  %212 = vmax.xlane.f32.xlu1 %v1057_v7 }
  0x3b   : > { %210 = vmax.xlane.f32.xlu0 %v1060_v8 }
  0x42   : > { %220 = vmax.xlane.f32.xlu2 %v1066_v9  ;;  %218 = vmax.xlane.f32.xlu1 %v1069_v10 }
  0x43   : > { %216 = vmax.xlane.f32.xlu0 %v1072_v11 }
  0x4a   : > { %226 = vmax.xlane.f32.xlu2 %v1078_v12  ;;  %224 = vmax.xlane.f32.xlu1 %v1081_v13 }
  0x4b   : > { %222 = vmax.xlane.f32.xlu0 %v1084_v14 }
  0x53   : > { %228 = vmax.xlane.f32.xlu0 %v1090_v15 }
  0x9d   : > { %v1095_v18 = vpop.xlane.xlu2 %206  ;;  %v1097_v19 = vpop.xlane.xlu1 %202 }
  0x9e   : > { %vm314_vm0 = vcmp.ge.f32.partialorder %v1033_v1, %v1097_v19  ;;  %v1101_v20 = vpop.xlane.xlu0 %198  ;;  %vm316_vm1 = vcmp.ge.f32.partialorder %v1030_v0, %v1095_v18  ;;  %v232_v16 = vsub.f32 %v1033_v1, %v1097_v19 }
  0x9f   : > { %v1106_v21 = vsel %vm314_vm0, %v1093_v17, 128  ;;  %vm312_vm2 = vcmp.ge.f32.partialorder %v1036_v2, %v1101_v20  ;;  %v1116_v25 = vsel %vm316_vm1, %v1093_v17, 128 }
  0xa0   : > { %v1111_v22 = vsel %vm312_vm2, %v1093_v17, 128  ;;  %v373_v23 = vshra.s32 %v1106_v21, 16  ;;  %v401_v30 = vshra.s32 %v1116_v25, 16 }
  0xa1   : > { %v345_v24 = vshra.s32 %v1111_v22, 16 }
  0xa2   : > { %v1118_v26 = vcvt.s32.f32 %v373_v23  ;;  %v1144_v35 = vcvt.s32.f32 %v401_v30 }
  0xa3   : > { %v1120_v27 = vcvt.s32.f32 %v345_v24 }
  0xa4   : > { %376 = vmin.xlane.f32.xlu0 %v1118_v26 }
  0xa5   : > { %348 = vmin.xlane.f32.xlu2 %v1120_v27  ;;  %v1124_v28 = vpop.xlane.xlu2 %208  ;;  %v1126_v29 = vpop.xlane.xlu1 %204 }
  0xa6   : > { %vm317_vm3 = vcmp.ge.f32.partialorder %v1042_v3, %v1124_v28  ;;  %v1131_v31 = vpop.xlane.xlu0 %200  ;;  %vm315_vm4 = vcmp.ge.f32.partialorder %v1045_v4, %v1126_v29 }
  0xa7   : > { %v1134_v32 = vsel %vm317_vm3, %v1093_v17, 128  ;;  %vm313_vm5 = vcmp.ge.f32.partialorder %v1048_v5, %v1131_v31  ;;  %v1148_v37 = vsel %vm315_vm4, %v1093_v17, 128 }
  0xa8   : > { %v1141_v33 = vsel %vm313_vm5, %v1093_v17, 128  ;;  %v415_v34 = vshra.s32 %v1134_v32, 16  ;;  %v387_v42 = vshra.s32 %v1148_v37, 16 }
  0xa9   : > { %v359_v36 = vshra.s32 %v1141_v33, 16 }
  0xaa   : > { %v1150_v38 = vcvt.s32.f32 %v415_v34  ;;  %v1178_v48 = vcvt.s32.f32 %v387_v42  ;;  %v231_v34 = vsub.f32 %v1048_v5, %v1131_v31  ;;  %v250_v31 = vmul.f32 1.442695, %v232_v16 }
  0xab   : > { %v1152_v39 = vcvt.s32.f32 %v359_v36 }
  0xac   : > { %418 = vmin.xlane.f32.xlu0 %v1150_v38  ;;  %807 = vpow2.f32 %v250_v31 }
  0xad   : > { %404 = vmin.xlane.f32.xlu2 %v1144_v35  ;;  %362 = vmin.xlane.f32.xlu1 %v1152_v39  ;;  %v1157_v40 = vpop.xlane.xlu2 %214  ;;  %v1159_v41 = vpop.xlane.xlu1 %212 }
  0xae   : > { %vm320_vm6 = vcmp.ge.f32.partialorder %v1054_v6, %v1157_v40  ;;  %vm319_vm7 = vcmp.ge.f32.partialorder %v1057_v7, %v1159_v41  ;;  %v1166_v43 = vpop.xlane.xlu0 %210 }
  0xaf   : > { %v1169_v44 = vsel %vm320_vm6, %v1093_v17, 128  ;;  %v1172_v45 = vsel %vm319_vm7, %v1093_v17, 128  ;;  %vm318_vm8 = vcmp.ge.f32.partialorder %v1060_v8, %v1166_v43 }
  0xb0   : > { %v457_v46 = vshra.s32 %v1169_v44, 16  ;;  %v443_v47 = vshra.s32 %v1172_v45, 16  ;;  %v1185_v51 = vsel %vm318_vm8, %v1093_v17, 128 }
  0xb1   : > { %v429_v54 = vshra.s32 %v1185_v51, 16 }
  0xb2   : > { %v1180_v49 = vcvt.s32.f32 %v457_v46  ;;  %v1182_v50 = vcvt.s32.f32 %v443_v47  ;;  %v248_v47 = vmul.f32 1.442695, %v231_v34 }
  0xb3   : > { %v1211_v60 = vcvt.s32.f32 %v429_v54 }
  0xb4   : > { %460 = vmin.xlane.f32.xlu0 %v1180_v49  ;;  %809 = vpow2.f32 %v248_v47 }
  0xb5   : > { %446 = vmin.xlane.f32.xlu2 %v1182_v50  ;;  %390 = vmin.xlane.f32.xlu1 %v1178_v48  ;;  %v1190_v52 = vpop.xlane.xlu2 %220  ;;  %v1192_v53 = vpop.xlane.xlu1 %218 }
  0xb6   : > { %vm323_vm9 = vcmp.ge.f32.partialorder %v1066_v9, %v1190_v52  ;;  %vm322_vm10 = vcmp.ge.f32.partialorder %v1069_v10, %v1192_v53  ;;  %v1199_v55 = vpop.xlane.xlu0 %216 }
  0xb7   : > { %v1202_v56 = vsel %vm323_vm9, %v1093_v17, 128  ;;  %v1205_v57 = vsel %vm322_vm10, %v1093_v17, 128  ;;  %vm321_vm11 = vcmp.ge.f32.partialorder %v1072_v11, %v1199_v55 }
  0xb8   : > { %v499_v58 = vshra.s32 %v1202_v56, 16  ;;  %v485_v59 = vshra.s32 %v1205_v57, 16  ;;  %v1218_v63 = vsel %vm321_vm11, %v1093_v17, 128 }
  0xb9   : > { %v471_v30 = vshra.s32 %v1218_v63, 16 }
  0xba   : > { %v1213_v61 = vcvt.s32.f32 %v499_v58  ;;  %v1215_v62 = vcvt.s32.f32 %v485_v59 }
  0xbb   : > { %v1248_v46 = vcvt.s32.f32 %v471_v30  ;;  %v234_v30 = vsub.f32 %v1030_v0, %v1095_v18  ;;  %v238_v0 = vsub.f32 %v1054_v6, %v1157_v40  ;;  %v233_v6 = vsub.f32 %v1045_v4, %v1126_v29 }
  0xbc   : > { %1504 = vst [vmem:[#allocation5_spill] sm:$0xff] %v1213_v61  ;;  %502 = vmin.xlane.f32.xlu0 %v1213_v61  ;;  %v235_v61 = vsub.f32 %v1042_v3, %v1124_v28  ;;  %v808_v28 = vpop.eup %807  ;;  %v241_v40 = vsub.f32 %v1066_v9, %v1190_v52  ;;  %v236_v4 = vsub.f32 %v1060_v8, %v1166_v43 }
  0xbd   : > { %488 = vmin.xlane.f32.xlu2 %v1215_v62  ;;  %432 = vmin.xlane.f32.xlu1 %v1211_v60  ;;  %v1225_v23 = vpop.xlane.xlu2 %226  ;;  %v1227_v24 = vpop.xlane.xlu1 %224  ;;  %v254_v31 = vmul.f32 1.442695, %v234_v30  ;;  %v262_v47 = vmul.f32 1.442695, %v238_v0  ;;  %v239_v8 = vsub.f32 %v1072_v11, %v1199_v55 }
  0xbe   : > { %vm326_vm12 = vcmp.ge.f32.partialorder %v1078_v12, %v1225_v23  ;;  %vm325_vm13 = vcmp.ge.f32.partialorder %v1081_v13, %v1227_v24  ;;  %v1236_v1 = vpop.xlane.xlu0 %222  ;;  %v244_v9 = vsub.f32 %v1078_v12, %v1225_v23  ;;  %v258_v29 = vmul.f32 1.442695, %v236_v4 }
  0xbf   : > { %v1239_v19 = vsel %vm326_vm12, %v1093_v17, 128  ;;  %v1242_v36 = vsel %vm325_vm13, %v1093_v17, 128  ;;  %vm324_vm14 = vcmp.ge.f32.partialorder %v1084_v14, %v1236_v1  ;;  %v264_v43 = vmul.f32 1.442695, %v239_v8 }
  0xc0   : > { %1505 = vst [vmem:[#allocation6_spill] sm:$0xff] %v1239_v19  ;;  %v541_v42 = vshra.s32 %v1239_v19, 16  ;;  %v527_v5 = vshra.s32 %v1242_v36, 16  ;;  %v1255_v59 = vsel %vm324_vm14, %v1093_v17, 128  ;;  %v230_v19 = vsub.f32 %v1036_v2, %v1101_v20 }
  0xc1   : > { %v513_v16 = vshra.s32 %v1255_v59, 16  ;;  %v274_v52 = vmul.f32 1.442695, %v244_v9  ;;  %v470_v8 = vand.u32 65535, %v1218_v63  ;;  %vm568_vm14 = vcmask 7168  }
  0xc2   : > { %v1250_v54 = vcvt.s32.f32 %v541_v42  ;;  %v1252_v58 = vcvt.s32.f32 %v527_v5  ;;  %v256_v42 = vmul.f32 1.442695, %v235_v61  ;;  %v246_v61 = vmul.f32 1.442695, %v230_v19 }
  0xc3   : > { %v1269_v5 = vcvt.s32.f32 %v513_v16  ;;  %v268_v19 = vmul.f32 1.442695, %v241_v40 }
  0xc4   : > { %1506 = vst [vmem:[#allocation7_spill] sm:$0xff] %v1250_v54  ;;  %544 = vmin.xlane.f32.xlu0 %v1250_v54  ;;  %v810_v54 = vpop.eup %809  ;;  %811 = vpow2.f32 %v256_v42 }
  0xc5   : > { %530 = vmin.xlane.f32.xlu2 %v1252_v58  ;;  %474 = vmin.xlane.f32.xlu1 %v1248_v46  ;;  %813 = vpow2.f32 %v254_v31 }
  0xc6   : > { %v1265_v34 = vpop.xlane.xlu0 %228  ;;  %815 = vpow2.f32 %v246_v61 }
  0xc7   : > { %vm327_vm15 = vcmp.ge.f32.partialorder %v1090_v15, %v1265_v34  ;;  %817 = vpow2.f32 %v262_v47 }
  0xc8   : > { %v1272_v3 = vsel %vm327_vm15, %v1093_v17, 128  ;;  %v237_v17 = vsub.f32 %v1057_v7, %v1159_v41  ;;  %v240_v7 = vsub.f32 %v1069_v10, %v1192_v53  ;;  %v252_v41 = vmul.f32 1.442695, %v233_v6 }
  0xc9   : > { %v555_v18 = vshra.s32 %v1272_v3, 16  ;;  %v243_v10 = vsub.f32 %v1081_v13, %v1227_v24  ;;  %v242_v13 = vsub.f32 %v1084_v14, %v1236_v1 }
  0xca   : > { %v260_v30 = vmul.f32 1.442695, %v237_v17  ;;  %v812_v2 = vpop.eup %811  ;;  %v266_v42 = vmul.f32 1.442695, %v240_v7 }
  0xcb   : > { %v1282_v16 = vcvt.s32.f32 %v555_v18  ;;  %v814_v20 = vpop.eup %813  ;;  %v272_v0 = vmul.f32 1.442695, %v243_v10  ;;  %v270_v24 = vmul.f32 1.442695, %v242_v13 }
  0xcc   : > { %282 = vadd.xlane.f32.xlu0 %v808_v28  ;;  %819 = vpow2.f32 %v260_v30  ;;  %v245_v30 = vsub.f32 %v1090_v15, %v1265_v34  ;;  %v358_v15 = vand.u32 65535, %v1141_v33  ;;  %v400_v34 = vand.u32 65535, %v1116_v25 }
  0xcd   : > { %280 = vadd.xlane.f32.xlu2 %v810_v54  ;;  %516 = vmin.xlane.f32.xlu1 %v1269_v5  ;;  %v816_v54 = vpop.eup %815  ;;  %821 = vpow2.f32 %v252_v41  ;;  %v386_v25 = vand.u32 65535, %v1148_v37  ;;  %v442_v33 = vand.u32 65535, %v1172_v45 }
  0xce   : > { %v818_v31 = vpop.eup %817  ;;  %823 = vpow2.f32 %v268_v19 }
  0xcf   : > { %825 = vpow2.f32 %v266_v42  ;;  %v444_v10 = vcvt.s32.f32 %v442_v33 }
  0xd0   : > { %827 = vpow2.f32 %v258_v29  ;;  %v428_v29 = vand.u32 65535, %v1185_v51 }
  0xd1   : > { %829 = vpow2.f32 %v274_v52  ;;  %v484_v52 = vand.u32 65535, %v1205_v57 }
  0xd2   : > { %v820_v28 = vpop.eup %819  ;;  %831 = vpow2.f32 %v272_v0 }
  0xd3   : > { %v822_v53 = vpop.eup %821  ;;  %833 = vpow2.f32 %v264_v43 }
  0xd4   : > { %288 = vadd.xlane.f32.xlu0 %v812_v2  ;;  %v824_v18 = vpop.eup %823  ;;  %835 = vpow2.f32 %v270_v24  ;;  %v276_v2 = vmul.f32 1.442695, %v245_v30  ;;  %v512_v24 = vand.u32 65535, %v1255_v59 }
  0xd5   : > { %286 = vadd.xlane.f32.xlu2 %v814_v20  ;;  %558 = vmin.xlane.f32.xlu1 %v1282_v16  ;;  %v826_v17 = vpop.eup %825  ;;  %v344_v20 = vand.u32 65535, %v1111_v22  ;;  %v360_v22 = vcvt.s32.f32 %v358_v15 }
  0xd6   : > { %v828_v12 = vpop.eup %827  ;;  %837 = vpow2.f32 %v276_v2  ;;  %v1507_v2 = vld [vmem:[#allocation5_spill] sm:$0xff] }
  0xd7   : > { %v830_v23 = vpop.eup %829  ;;  %v346_v14 = vcvt.s32.f32 %v344_v20  ;;  %v1508_v20 = vld [vmem:[#allocation6_spill] sm:$0xff] }
  0xd8   : > { %v832_v61 = vpop.eup %831 }
  0xd9   : > { %v834_v47 = vpop.eup %833 }
  0xda   : > { %v836_v11 = vpop.eup %835 }
  0xdc   : > { %294 = vadd.xlane.f32.xlu0 %v818_v31  ;;  %v838_v55 = vpop.eup %837  ;;  %v372_v31 = vand.u32 65535, %v1106_v21 }
  0xdd   : > { %292 = vadd.xlane.f32.xlu2 %v820_v28  ;;  %278 = vadd.xlane.f32.xlu1 %v816_v54  ;;  %v402_v54 = vcvt.s32.f32 %v400_v34 }
  0xe4   : > { %300 = vadd.xlane.f32.xlu0 %v824_v18  ;;  %v486_v18 = vcvt.s32.f32 %v484_v52 }
  0xe5   : > { %298 = vadd.xlane.f32.xlu2 %v826_v17  ;;  %284 = vadd.xlane.f32.xlu1 %v822_v53  ;;  %v414_v53 = vand.u32 65535, %v1134_v32 }
  0xe7   : > { %v416_v51 = vcvt.s32.f32 %v414_v53 }
  0xec   : > { %306 = vadd.xlane.f32.xlu0 %v830_v23 }
  0xed   : > { %304 = vadd.xlane.f32.xlu2 %v832_v61  ;;  %290 = vadd.xlane.f32.xlu1 %v828_v12  ;;  %v526_v12 = vand.u32 65535, %v1242_v36 }
  0xef   : > { %v528_v61 = vcvt.s32.f32 %v526_v12 }
  0xf5   : > { %296 = vadd.xlane.f32.xlu1 %v834_v47 }
  0xfd   : > { %302 = vadd.xlane.f32.xlu1 %v836_v11 }
 0x105   : > { %308 = vadd.xlane.f32.xlu1 %v838_v55  ;;  %v554_v55 = vand.u32 65535, %v1272_v3 }
 0x117   : > { %v1304_v6 = vpop.xlane.xlu0 %376 }
 0x118   : > { %v1306_v40 = vpop.xlane.xlu2 %348  ;;  %vm378_vm3 = vcmp.eq.f32.partialorder %v1118_v26, %v1304_v6 }
 0x119   : > { %vm350_vm0 = vcmp.eq.f32.partialorder %v1120_v27, %v1306_v40 }
 0x11a   : > { %v351_v1 = vsel %vm350_vm0, %v346_v14, inf  ;;  %v540_v14 = vand.u32 65535, %v1508_v20 }
 0x11b   : > { %352 = vmin.xlane.f32.xlu0 %v351_v1 }
 0x11c   : > { %v542_v33 = vcvt.s32.f32 %v540_v14 }
 0x11f   : > { %v1312_v7 = vpop.xlane.xlu0 %418 }
 0x120   : > { %v1314_v41 = vpop.xlane.xlu2 %404  ;;  %v1316_v19 = vpop.xlane.xlu1 %362  ;;  %vm420_vm6 = vcmp.eq.f32.partialorder %v1150_v38, %v1312_v7  ;;  %v456_v38 = vand.u32 65535, %v1169_v44 }
 0x121   : > { %vm364_vm1 = vcmp.eq.f32.partialorder %v1152_v39, %v1316_v19  ;;  %vm406_vm2 = vcmp.eq.f32.partialorder %v1144_v35, %v1314_v41  ;;  %v388_v39 = vcvt.s32.f32 %v386_v25  ;;  %v374_v35 = vcvt.s32.f32 %v372_v31 }
 0x122   : > { %v365_v27 = vsel %vm364_vm1, %v360_v22, inf  ;;  %v407_v42 = vsel %vm406_vm2, %v402_v54, inf  ;;  %v421_v17 = vsel %vm420_vm6, %v416_v51, inf  ;;  %v458_v63 = vcvt.s32.f32 %v456_v38 }
 0x123   : > { %366 = vmin.xlane.f32.xlu2 %v365_v27  ;;  %408 = vmin.xlane.f32.xlu1 %v407_v42  ;;  %v379_v45 = vsel %vm378_vm3, %v374_v35, inf  ;;  %v556_v54 = vcvt.s32.f32 %v554_v55  ;;  %v1509_v42 = vld [vmem:[#allocation7_spill] sm:$0xff] }
 0x127   : > { %v1325_v28 = vpop.xlane.xlu0 %460 }
 0x128   : > { %v1327_v4 = vpop.xlane.xlu2 %446  ;;  %v1329_v9 = vpop.xlane.xlu1 %390  ;;  %vm462_vm9 = vcmp.eq.f32.partialorder %v1180_v49, %v1325_v28  ;;  %v498_v49 = vand.u32 65535, %v1202_v56 }
 0x129   : > { %vm392_vm4 = vcmp.eq.f32.partialorder %v1178_v48, %v1329_v9  ;;  %vm448_vm5 = vcmp.eq.f32.partialorder %v1182_v50, %v1327_v4  ;;  %v430_v50 = vcvt.s32.f32 %v428_v29  ;;  %v463_v13 = vsel %vm462_vm9, %v458_v63, inf }
 0x12a   : > { %v393_v37 = vsel %vm392_vm4, %v388_v39, inf  ;;  %v449_v21 = vsel %vm448_vm5, %v444_v10, inf  ;;  %v500_v59 = vcvt.s32.f32 %v498_v49 }
 0x12b   : > { %394 = vmin.xlane.f32.xlu0 %v393_v37  ;;  %450 = vmin.xlane.f32.xlu1 %v449_v21 }
 0x12c   : > { %380 = vmin.xlane.f32.xlu2 %v379_v45 }
 0x12f   : > { %v1340_v26 = vpop.xlane.xlu0 %502 }
 0x130   : > { %v1342_v0 = vpop.xlane.xlu2 %488  ;;  %v1344_v48 = vpop.xlane.xlu1 %432  ;;  %vm504_vm12 = vcmp.eq.f32.partialorder %v1507_v2, %v1340_v26 }
 0x131   : > { %vm434_vm7 = vcmp.eq.f32.partialorder %v1211_v60, %v1344_v48  ;;  %vm490_vm8 = vcmp.eq.f32.partialorder %v1215_v62, %v1342_v0  ;;  %v472_v62 = vcvt.s32.f32 %v470_v8  ;;  %v505_v56 = vsel %vm504_vm12, %v500_v59, inf }
 0x132   : > { %v435_v57 = vsel %vm434_vm7, %v430_v50, inf  ;;  %v491_v32 = vsel %vm490_vm8, %v486_v18, inf }
 0x133   : > { %436 = vmin.xlane.f32.xlu0 %v435_v57  ;;  %492 = vmin.xlane.f32.xlu1 %v491_v32 }
 0x134   : > { %422 = vmin.xlane.f32.xlu2 %v421_v17 }
 0x137   : > { %v1355_v43 = vpop.xlane.xlu0 %544 }
 0x138   : > { %v1357_v60 = vpop.xlane.xlu2 %530  ;;  %v1359_v23 = vpop.xlane.xlu1 %474  ;;  %vm546_vm15 = vcmp.eq.f32.partialorder %v1509_v42, %v1355_v43 }
 0x139   : > { %vm476_vm10 = vcmp.eq.f32.partialorder %v1248_v46, %v1359_v23  ;;  %vm532_vm11 = vcmp.eq.f32.partialorder %v1252_v58, %v1357_v60  ;;  %v514_v58 = vcvt.s32.f32 %v512_v24  ;;  %v547_v10 = vsel %vm546_vm15, %v542_v33, inf }
 0x13a   : > { %v477_v36 = vsel %vm476_vm10, %v472_v62, inf  ;;  %v533_v44 = vsel %vm532_vm11, %v528_v61, inf }
 0x13b   : > { %478 = vmin.xlane.f32.xlu0 %v477_v36  ;;  %534 = vmin.xlane.f32.xlu1 %v533_v44 }
 0x13c   : > { %464 = vmin.xlane.f32.xlu2 %v463_v13 }
 0x13f   : > { %v283_v47 = vpop.xlane.xlu0 %282 }
 0x140   : > { %v281_v30 = vpop.xlane.xlu2 %280  ;;  %v1371_v46 = vpop.xlane.xlu1 %516  ;;  %839 = vlog2.f32 %v283_v47 }
 0x141   : > { %841 = vlog2.f32 %v281_v30  ;;  %vm518_vm13 = vcmp.eq.f32.partialorder %v1269_v5, %v1371_v46 }
 0x142   : > { %v519_v11 = vsel %vm518_vm13, %v514_v58, inf }
 0x143   : > { %520 = vmin.xlane.f32.xlu0 %v519_v11 }
 0x144   : > { %506 = vmin.xlane.f32.xlu2 %v505_v56 }
 0x146   : > { %v840_v1 = vpop.eup %839 }
 0x147   : > { %v842_v15 = vpop.eup %841  ;;  %v590_v34 = vmul.f32 0.6931472, %v840_v1  ;;  %v289_v22 = vpop.xlane.xlu0 %288 }
 0x148   : > { %v588_v5 = vmul.f32 0.6931472, %v842_v15  ;;  %v287_v3 = vpop.xlane.xlu2 %286  ;;  %v1389_v27 = vpop.xlane.xlu1 %558  ;;  %843 = vlog2.f32 %v289_v22 }
 0x149   : > { %v619_v25 = vsub.f32 0.0, %v590_v34  ;;  %845 = vlog2.f32 %v287_v3  ;;  %vm560_vm0 = vcmp.eq.f32.partialorder %v1282_v16, %v1389_v27 }
 0x14a   : > { %v618_v31 = vsub.f32 0.0, %v588_v5  ;;  %v561_v39 = vsel %vm560_vm0, %v556_v54, inf }
 0x14b   : > { %635 = vst.msk [vmem:[%s1387_s24 + $0x10] sm:$0xff] %vm568_vm14, %v619_v25  ;;  %562 = vmin.xlane.f32.xlu0 %v561_v39 }
 0x14c   : > { %634 = vst.msk [vmem:[%s1387_s24 + $0x8] sm:$0xff] %vm568_vm14, %v618_v31  ;;  %548 = vmin.xlane.f32.xlu2 %v547_v10 }
 0x14e   : > { %v844_v35 = vpop.eup %843 }
 0x14f   : > { %v846_v37 = vpop.eup %845  ;;  %v596_v21 = vmul.f32 0.6931472, %v844_v35  ;;  %v295_v45 = vpop.xlane.xlu0 %294 }
 0x150   : > { %v594_v29 = vmul.f32 0.6931472, %v846_v37  ;;  %v293_v52 = vpop.xlane.xlu2 %292  ;;  %v279_v53 = vpop.xlane.xlu1 %278  ;;  %847 = vlog2.f32 %v295_v45 }
 0x151   : > { %v622_v16 = vsub.f32 0.0, %v596_v21  ;;  %849 = vlog2.f32 %v293_v52 }
 0x152   : > { %v621_v50 = vsub.f32 0.0, %v594_v29  ;;  %851 = vlog2.f32 %v279_v53  ;;  %v355_v53 = vcvt.f32.s32 %v1306_v40 }
 0x153   : > { %638 = vst.msk [vmem:[%s1387_s24 + $0x28] sm:$0xff] %vm568_vm14, %v622_v16 }
 0x154   : > { %637 = vst.msk [vmem:[%s1387_s24 + $0x20] sm:$0xff] %vm568_vm14, %v621_v50  ;;  %v356_v50 = vshll.u32 %v355_v53, 16  ;;  %v523_v53 = vcvt.f32.s32 %v1371_v46  ;;  %v565_v46 = vcvt.f32.s32 %v1389_v27 }
 0x156   : > { %v848_v18 = vpop.eup %847 }
 0x157   : > { %v850_v51 = vpop.eup %849  ;;  %v602_v57 = vmul.f32 0.6931472, %v848_v18  ;;  %v301_v32 = vpop.xlane.xlu0 %300 }
 0x158   : > { %v852_v17 = vpop.eup %851  ;;  %v600_v8 = vmul.f32 0.6931472, %v850_v51  ;;  %v299_v12 = vpop.xlane.xlu2 %298  ;;  %853 = vlog2.f32 %v301_v32  ;;  %v369_v32 = vcvt.f32.s32 %v1316_v19 }
 0x159   : > { %v285_v38 = vpop.xlane.xlu1 %284  ;;  %v586_v62 = vmul.f32 0.6931472, %v852_v17  ;;  %v625_v61 = vsub.f32 0.0, %v602_v57  ;;  %855 = vlog2.f32 %v299_v12  ;;  %v411_v57 = vcvt.f32.s32 %v1314_v41 }
 0x15a   : > { %v624_v63 = vsub.f32 0.0, %v600_v8  ;;  %857 = vlog2.f32 %v285_v38  ;;  %v370_v12 = vshll.u32 %v369_v32, 16  ;;  %v383_v41 = vcvt.f32.s32 %v1304_v6 }
 0x15b   : > { %v617_v36 = vsub.f32 0.0, %v586_v62  ;;  %641 = vst.msk [vmem:[%s1387_s24 + $0x40] sm:$0xff] %vm568_vm14, %v625_v61  ;;  %v412_v8 = vshll.u32 %v411_v57, 16  ;;  %v439_v6 = vcvt.f32.s32 %v1344_v48 }
 0x15c   : > { %640 = vst.msk [vmem:[%s1387_s24 + $0x38] sm:$0xff] %vm568_vm14, %v624_v63 }
 0x15d   : > { %633 = vst.msk [vmem:[%s1387_s24] sm:$0xff] %vm568_vm14, %v617_v36  ;;  %v453_v36 = vcvt.f32.s32 %v1327_v4 }
 0x15e   : > { %v854_v44 = vpop.eup %853 }
 0x15f   : > { %v856_v13 = vpop.eup %855  ;;  %v608_v24 = vmul.f32 0.6931472, %v854_v44  ;;  %v307_v49 = vpop.xlane.xlu0 %306  ;;  %v397_v44 = vcvt.f32.s32 %v1329_v9 }
 0x160   : > { %v858_v47 = vpop.eup %857  ;;  %v606_v30 = vmul.f32 0.6931472, %v856_v13  ;;  %v305_v58 = vpop.xlane.xlu2 %304  ;;  %859 = vlog2.f32 %v307_v49 }
 0x161   : > { %v291_v2 = vpop.xlane.xlu1 %290  ;;  %v592_v59 = vmul.f32 0.6931472, %v858_v47  ;;  %v628_v11 = vsub.f32 0.0, %v608_v24  ;;  %861 = vlog2.f32 %v305_v58  ;;  %v454_v24 = vshll.u32 %v453_v36, 16 }
 0x162   : > { %v627_v56 = vsub.f32 0.0, %v606_v30  ;;  %863 = vlog2.f32 %v291_v2  ;;  %v398_v49 = vshll.u32 %v397_v44, 16  ;;  %v384_v2 = vshll.u32 %v383_v41, 16 }
 0x163   : > { %v620_v55 = vsub.f32 0.0, %v592_v59  ;;  %644 = vst.msk [vmem:[%s1387_s24 + $0x58] sm:$0xff] %vm568_vm14, %v628_v11 }
 0x164   : > { %643 = vst.msk [vmem:[%s1387_s24 + $0x50] sm:$0xff] %vm568_vm14, %v627_v56  ;;  %v495_v56 = vcvt.f32.s32 %v1342_v0 }
 0x165   : > { %636 = vst.msk [vmem:[%s1387_s24 + $0x18] sm:$0xff] %vm568_vm14, %v620_v55  ;;  %v425_v55 = vcvt.f32.s32 %v1312_v7  ;;  %v537_v7 = vcvt.f32.s32 %v1357_v60 }
 0x166   : > { %v860_v20 = vpop.eup %859 }
 0x167   : > { %v862_v14 = vpop.eup %861  ;;  %v614_v1 = vmul.f32 0.6931472, %v860_v20 }
 0x168   : > { %v864_v15 = vpop.eup %863  ;;  %v612_v34 = vmul.f32 0.6931472, %v862_v14 }
 0x169   : > { %v297_v22 = vpop.xlane.xlu1 %296  ;;  %v598_v54 = vmul.f32 0.6931472, %v864_v15  ;;  %v631_v5 = vsub.f32 0.0, %v614_v1  ;;  %v496_v1 = vshll.u32 %v495_v56, 16  ;;  %v440_v15 = vshll.u32 %v439_v6, 16 }
 0x16a   : > { %865 = vlog2.f32 %v297_v22  ;;  %v630_v3 = vsub.f32 0.0, %v612_v34 }
 0x16b   : > { %v623_v42 = vsub.f32 0.0, %v598_v54  ;;  %647 = vst.msk [vmem:[%s1387_s24 + $0x70] sm:$0xff] %vm568_vm14, %v631_v5  ;;  %v426_v54 = vshll.u32 %v425_v55, 16 }
 0x16c   : > { %646 = vst.msk [vmem:[%s1387_s24 + $0x68] sm:$0xff] %vm568_vm14, %v630_v3 }
 0x16d   : > { %639 = vst.msk [vmem:[%s1387_s24 + $0x30] sm:$0xff] %vm568_vm14, %v623_v42 }
 0x170   : > { %v866_v25 = vpop.eup %865 }
 0x171   : > { %v604_v33 = vmul.f32 0.6931472, %v866_v25  ;;  %v303_v31 = vpop.xlane.xlu1 %302  ;;  %v481_v25 = vcvt.f32.s32 %v1359_v23 }
 0x172   : > { %867 = vlog2.f32 %v303_v31 }
 0x173   : > { %v626_v39 = vsub.f32 0.0, %v604_v33  ;;  %v467_v33 = vcvt.f32.s32 %v1325_v28 }
 0x175   : > { %642 = vst.msk [vmem:[%s1387_s24 + $0x48] sm:$0xff] %vm568_vm14, %v626_v39 }
 0x178   : > { %v868_v10 = vpop.eup %867 }
 0x179   : > { %v610_v35 = vmul.f32 0.6931472, %v868_v10  ;;  %v309_v37 = vpop.xlane.xlu1 %308  ;;  %v538_v10 = vshll.u32 %v537_v7, 16 }
 0x17a   : > { %869 = vlog2.f32 %v309_v37 }
 0x17b   : > { %v629_v21 = vsub.f32 0.0, %v610_v35  ;;  %v482_v35 = vshll.u32 %v481_v25, 16 }
 0x17d   : > { %645 = vst.msk [vmem:[%s1387_s24 + $0x60] sm:$0xff] %vm568_vm14, %v629_v21 }
 0x180   : > { %v870_v45 = vpop.eup %869 }
 0x181   : > { %v616_v29 = vmul.f32 0.6931472, %v870_v45  ;;  %v468_v45 = vshll.u32 %v467_v33, 16 }
 0x183   : > { %v632_v52 = vsub.f32 0.0, %v616_v29 }
 0x185   : > { %648 = vst.msk [vmem:[%s1387_s24 + $0x78] sm:$0xff] %vm568_vm14, %v632_v52 }
 0x18e   : > { %v353_v16 = vpop.xlane.xlu0 %352 }
 0x18f   : > { %v354_v18 = vcvt.f32.s32 %v353_v16  ;;  %v509_v16 = vcvt.f32.s32 %v1340_v26  ;;  %v551_v26 = vcvt.f32.s32 %v1355_v43 }
 0x191   : > { %v357_v51 = vadd.s32 %v356_v50, %v354_v18  ;;  %v524_v18 = vshll.u32 %v523_v53, 16  ;;  %v510_v32 = vshll.u32 %v509_v16, 16 }
 0x193   : > { %569 = vst.msk [vmem:[%s1433_s27] sm:$0xff] %vm568_vm14, %v357_v51 }
 0x196   : > { %v367_v40 = vpop.xlane.xlu2 %366  ;;  %v409_v17 = vpop.xlane.xlu1 %408 }
 0x197   : > { %v368_v38 = vcvt.f32.s32 %v367_v40  ;;  %v410_v62 = vcvt.f32.s32 %v409_v17 }
 0x199   : > { %v371_v61 = vadd.s32 %v370_v12, %v368_v38  ;;  %v413_v63 = vadd.s32 %v412_v8, %v410_v62  ;;  %v566_v38 = vshll.u32 %v565_v46, 16 }
 0x19b   : > { %570 = vst.msk [vmem:[%s1433_s27 + $0x8] sm:$0xff] %vm568_vm14, %v371_v61 }
 0x19c   : > { %573 = vst.msk [vmem:[%s1433_s27 + $0x20] sm:$0xff] %vm568_vm14, %v413_v63  ;;  %v552_v63 = vshll.u32 %v551_v26, 16 }
 0x19e   : > { %v451_v19 = vpop.xlane.xlu1 %450  ;;  %v395_v13 = vpop.xlane.xlu0 %394 }
 0x19f   : > { %v452_v47 = vcvt.f32.s32 %v451_v19  ;;  %v381_v30 = vpop.xlane.xlu2 %380  ;;  %v396_v58 = vcvt.f32.s32 %v395_v13 }
 0x1a0   : > { %v382_v4 = vcvt.f32.s32 %v381_v30 }
 0x1a1   : > { %v455_v59 = vadd.s32 %v454_v24, %v452_v47  ;;  %v399_v9 = vadd.s32 %v398_v49, %v396_v58 }
 0x1a2   : > { %v385_v11 = vadd.s32 %v384_v2, %v382_v4 }
 0x1a3   : > { %576 = vst.msk [vmem:[%s1433_s27 + $0x38] sm:$0xff] %vm568_vm14, %v455_v59 }
 0x1a4   : > { %571 = vst.msk [vmem:[%s1433_s27 + $0x10] sm:$0xff] %vm568_vm14, %v385_v11 }
 0x1a5   : > { %572 = vst.msk [vmem:[%s1433_s27 + $0x18] sm:$0xff] %vm568_vm14, %v399_v9 }
 0x1a6   : > { %v493_v20 = vpop.xlane.xlu1 %492  ;;  %v437_v14 = vpop.xlane.xlu0 %436 }
 0x1a7   : > { %v494_v34 = vcvt.f32.s32 %v493_v20  ;;  %v423_v22 = vpop.xlane.xlu2 %422  ;;  %v438_v0 = vcvt.f32.s32 %v437_v14 }
 0x1a8   : > { %v424_v48 = vcvt.f32.s32 %v423_v22 }
 0x1a9   : > { %v497_v5 = vadd.s32 %v496_v1, %v494_v34  ;;  %v441_v3 = vadd.s32 %v440_v15, %v438_v0 }
 0x1aa   : > { %v427_v42 = vadd.s32 %v426_v54, %v424_v48 }
 0x1ab   : > { %579 = vst.msk [vmem:[%s1433_s27 + $0x50] sm:$0xff] %vm568_vm14, %v497_v5 }
 0x1ac   : > { %574 = vst.msk [vmem:[%s1433_s27 + $0x28] sm:$0xff] %vm568_vm14, %v427_v42 }
 0x1ad   : > { %575 = vst.msk [vmem:[%s1433_s27 + $0x30] sm:$0xff] %vm568_vm14, %v441_v3 }
 0x1ae   : > { %v535_v31 = vpop.xlane.xlu1 %534  ;;  %v479_v39 = vpop.xlane.xlu0 %478 }
 0x1af   : > { %v536_v37 = vcvt.f32.s32 %v535_v31  ;;  %v465_v21 = vpop.xlane.xlu2 %464  ;;  %v480_v60 = vcvt.f32.s32 %v479_v39 }
 0x1b0   : > { %v466_v23 = vcvt.f32.s32 %v465_v21 }
 0x1b1   : > { %v539_v29 = vadd.s32 %v538_v10, %v536_v37  ;;  %v483_v52 = vadd.s32 %v482_v35, %v480_v60 }
 0x1b2   : > { %v469_v28 = vadd.s32 %v468_v45, %v466_v23 }
 0x1b3   : > { %582 = vst.msk [vmem:[%s1433_s27 + $0x68] sm:$0xff] %vm568_vm14, %v539_v29 }
 0x1b4   : > { %577 = vst.msk [vmem:[%s1433_s27 + $0x40] sm:$0xff] %vm568_vm14, %v469_v28 }
 0x1b5   : > { %578 = vst.msk [vmem:[%s1433_s27 + $0x48] sm:$0xff] %vm568_vm14, %v483_v52 }
 0x1b6   : > { %v521_v50 = vpop.xlane.xlu0 %520 }
 0x1b7   : > { %v507_v51 = vpop.xlane.xlu2 %506  ;;  %v522_v57 = vcvt.f32.s32 %v521_v50 }
 0x1b8   : > { %v508_v40 = vcvt.f32.s32 %v507_v51 }
 0x1b9   : > { %v525_v17 = vadd.s32 %v524_v18, %v522_v57 }
 0x1ba   : > { %v511_v8 = vadd.s32 %v510_v32, %v508_v40 }
 0x1bb   : > { %581 = vst.msk [vmem:[%s1433_s27 + $0x60] sm:$0xff] %vm568_vm14, %v525_v17 }
 0x1bc   : > { %580 = vst.msk [vmem:[%s1433_s27 + $0x58] sm:$0xff] %vm568_vm14, %v511_v8 }
 0x1be   : > { %v563_v12 = vpop.xlane.xlu0 %562 }
 0x1bf   : > { %v549_v62 = vpop.xlane.xlu2 %548  ;;  %v564_v61 = vcvt.f32.s32 %v563_v12 }
 0x1c0   : > { %v550_v36 = vcvt.f32.s32 %v549_v62 }
 0x1c1   : > { %v567_v44 = vadd.s32 %v566_v38, %v564_v61 }
 0x1c2   : > { %v553_v41 = vadd.s32 %v552_v63, %v550_v36 }
 0x1c3   : > { %584 = vst.msk [vmem:[%s1433_s27 + $0x78] sm:$0xff] %vm568_vm14, %v567_v44 }
 0x1c4   : > { %583 = vst.msk [vmem:[%s1433_s27 + $0x70] sm:$0xff] %vm568_vm14, %v553_v41 }
 0x1c5 PF: > { %p13_p7 = scmp.ge.s32.totalorder %s974_s14, 6   ;;  %s1510_s9 = smov %s927_s10 }
 0x1c6   : > { %s1511_s10 = smov %s931_s11  ;;  %s1512_s11 = smov %s984_s17 }
 0x1c7   : > { %s1513_s12 = smov %s974_s14  ;;  %15 = sbr.rel (!%p13_p7) target bundleno = 3 (0x3), region = 76 }
 0x1cc   :  { %688 = vsyncpa [#allocation3], 1 }
 0x1cd   :  { %690 = vsyncpa [#allocation3 + $0x1], 1 }

</bundles_post_ra>
